<compile_context>
chip_gen: v7x
topology: tpu7x:2x2x1
jax: 0.10.0
libtpu: 0.0.40
codegen_flags: <defaults>
</compile_context>

<pallas_src>
import jax
import jax.numpy as jnp
from jax import lax
from jax.experimental import pallas as pl
from jax.experimental.pallas import tpu as pltpu


# ----------------------------------------------------------------------------
# VMEM planning (generation-aware).
# ----------------------------------------------------------------------------
def _vmem_plan():
    """Returns (resident_block_budget_bytes, mosaic_vmem_limit_bytes)."""
    kind = ""
    try:
        kind = jax.devices()[0].device_kind.lower()
    except Exception:
        pass
    phys = None
    try:
        cap = getattr(pltpu.get_tpu_info(), "vmem_capacity_bytes", None)
        if cap:
            phys = int(cap)
    except Exception:
        phys = None
    if phys is None:
        if "v2" in kind or "v3" in kind:
            phys = 16 * 1024 * 1024
        elif "v7" in kind or "7x" in kind:
            phys = 64 * 1024 * 1024
        else:                                    # v4 / v5e / v6e
            phys = 128 * 1024 * 1024
    if "v7" in kind or "7x" in kind:             # per-core cap on v7x
        phys = min(phys, 64 * 1024 * 1024)
    phys = min(phys, 128 * 1024 * 1024)
    budget = max(int(phys * 0.65), 8 * 1024 * 1024)    # resident blocks
    limit = max(int(phys * 0.85), 12 * 1024 * 1024)    # Mosaic scoped limit
    return budget, limit


def _pick_n_blk(N, per_batch_bytes, avail_bytes, group):
    """Largest divisor of N whose double-buffered blocks fit `avail_bytes`.

    Preference: even grid length (keeps both v7x TensorCores busy), >= 2 grid
    steps (DMA/compute pipelining), n_blk divisible by the batch group size
    (weight-push amortization), then the largest block.
    """
    cap = max(1, int(avail_bytes) // max(int(per_batch_bytes), 1))
    best_d, best_key = 1, None
    for d in range(1, N + 1):
        if N % d or d > cap:
            continue
        grid = N // d
        key = (grid % 2 == 0, grid >= 2, d % group == 0, d)
        if best_key is None or key > best_key:
            best_d, best_key = d, key
    return best_d


# ----------------------------------------------------------------------------
# Kernel factory.
# ----------------------------------------------------------------------------
def _make_unit_tcn_kernel(*, n_blk, G, n_slots, C_in, C_out, K, stride, pad,
                          T, T_out, V, in_is_padded):
    """Builds the kernel body with all shape/tiling params closed over."""
    M = T_out * V                     # lane-dense output width per batch elem
    n_groups = n_blk // G

    # Static per-tap bookkeeping (python ints, resolved at trace time).
    taps = []
    for k in range(K):
        if in_is_padded:
            lo, hi = 0, T_out                      # wrapper already padded T
            phase, src = k % stride, k // stride
        else:
            lo = max(0, pad - k)                   # clamp vs unpadded input;
            hi = min(T_out, T + pad - k)           # boundary zero-filled below
            phase, src = 0, lo + k - pad
        taps.append((k, lo, hi, phase, src))

    def kernel(x_ref, w_ref, scale_ref, shift_ref, o_ref, col_ref):
        # x_ref:     (n_blk, P, C_in, L)      compute dtype
        # w_ref:     (C_out, K*C_in)          compute dtype
        # scale_ref: (C_out, 1) f32 ; shift_ref: (C_out, 1) f32
        # o_ref:     (n_blk, C_out, T_out*V)  out dtype
        # col_ref:   (n_slots, K*C_in, G*M)   ping-pong im2col scratch (VMEM)

        # Zero the (static, tiny) boundary columns of every im2col buffer: this
        # implements the conv's temporal zero-padding with no HBM pad. These
        # columns are never overwritten by the per-batch copies below.
        for slot in range(n_slots):
            for gb in range(G):
                base = gb * M
                for (k, lo, hi, _phase, _src) in taps:
                    r0 = k * C_in
                    if lo > 0:
                        col_ref[slot, r0:r0 + C_in, base:base + lo * V] = (
                            jnp.zeros((C_in, lo * V), col_ref.dtype))
                    if hi < T_out:
                        col_ref[slot, r0:r0 + C_in, base + hi * V:base + M] = (
                            jnp.zeros((C_in, (T_out - hi) * V), col_ref.dtype))

        def build_col(g, slot):
            # im2col for the G batch elements of group g into buffer `slot`:
            # one contiguous lane-dense slice copy per (batch, tap).
            for gb in range(G):
                b = g * G + gb
                base = gb * M
                for (k, lo, hi, phase, src) in taps:
                    if hi <= lo:
                        continue
                    r0 = k * C_in
                    width = (hi - lo) * V
                    col_ref[slot, r0:r0 + C_in,
                            base + lo * V:base + hi * V] = (
                        x_ref[b, phase, :, src * V:src * V + width])

        def matmul_store(g, slot):
            # One fused MXU matmul per group: contraction depth K*C_in, lane
            # width G*M (weights are pushed once for all G batch elements).
            acc = jnp.dot(w_ref[...], col_ref[slot],
                          preferred_element_type=jnp.float32)
            y = acc * scale_ref[...] + shift_ref[...]      # f32 BN epilogue
            for gb in range(G):
                o_ref[g * G + gb] = (
                    y[:, gb * M:(gb + 1) * M].astype(o_ref.dtype))

        def process(g, slot):
            build_col(g, slot)
            matmul_store(g, slot)

        # Ping-pong over groups: copies into slot 1 for group 2i+1 carry no
        # dependency on the matmul reading slot 0 for group 2i, so the copy
        # (vld/vst/XLU) and the matmul (MXU) can overlap. fori_loop (effective
        # unroll=2 via the pair body) bounds live ranges / code size.
        n_pairs = n_groups // 2
        if n_pairs >= 2:
            def pair_body(i, carry):
                g0 = i * 2
                process(g0, 0)
                process(g0 + 1, 1)
                return carry
            lax.fori_loop(0, n_pairs, pair_body, 0)
        else:
            for i in range(n_pairs):
                process(2 * i, 0)
                process(2 * i + 1, 1)
        if n_groups % 2 == 1:
            process(n_groups - 1, 0)

    return kernel


# ----------------------------------------------------------------------------
# Wrapper.
# ----------------------------------------------------------------------------
def unit_tcn_forward(x, w, bn_scale, bn_shift, *, kernel_size, stride=1,
                     compute_dtype=jnp.bfloat16, out_dtype=None,
                     group_size=2, vmem_budget_bytes=None):
    """unit_tcn forward (inference BN): x (N,C_in,T,V), w (C_out,C_in,K),
    bn_scale/bn_shift (C_out,). Returns (N, C_out, T_out, V) in `out_dtype`
    (default x.dtype; pass jnp.bfloat16 to halve store/HBM writeback).
    Pass x already in `compute_dtype` to skip the wrapper-side cast pass."""
    N, C_in, T, V = x.shape
    C_out = w.shape[0]
    K = kernel_size
    pad = (K - 1) // 2
    T_pad = T + 2 * pad
    T_out = (T_pad - K) // stride + 1
    M = T_out * V
    out_dtype = x.dtype if out_dtype is None else jnp.dtype(out_dtype)

    budget, vmem_limit = _vmem_plan()
    if vmem_budget_bytes is not None:
        budget = int(vmem_budget_bytes)

    # Weights reordered tap-major to match im2col rows (row = k*C_in + ci).
    # BN scale is applied in the f32 epilogue (NOT folded into bf16 weights).
    w2 = jnp.transpose(w, (0, 2, 1)).reshape(C_out, K * C_in).astype(compute_dtype)
    scale2 = bn_scale.reshape(C_out, 1).astype(jnp.float32)
    shift2 = bn_shift.reshape(C_out, 1).astype(jnp.float32)

    xc = x if x.dtype == jnp.dtype(compute_dtype) else x.astype(compute_dtype)
    if stride == 1:
        # No HBM padding: free reshape to a lane-dense (T*V) slab.
        P, L = 1, T * V
        x4 = xc.reshape(N, 1, C_in, L)
        in_is_padded = False
    else:
        # stride>1: pad + phase-decompose T in the wrapper so every tap is one
        # contiguous lane-dense slice in-kernel. Only the phases a tap actually
        # reads are materialized/DMA'd (K==1 -> a single phase).
        # TODO(synk): handle pad/phase split in-kernel (phase-aware index_map)
        #             to avoid this extra wrapper-side HBM pass.
        P = min(stride, K)
        Tq = -(-T_pad // stride)                   # ceil(T_pad / stride)
        extra = Tq * stride - T_pad
        xp = jnp.pad(xc, ((0, 0), (0, 0), (pad, pad + extra), (0, 0)))
        x4 = (xp.reshape(N, C_in, Tq, stride, V)[:, :, :, :P, :]
                .transpose(0, 3, 1, 2, 4)
                .reshape(N, P, C_in, Tq * V))
        L = Tq * V
        in_is_padded = True

    # ---- VMEM accounting: everything resident per grid step ----------------
    isz_c = jnp.dtype(compute_dtype).itemsize
    isz_o = jnp.dtype(out_dtype).itemsize
    # Group batches per dot only when the per-batch lane width is 128-aligned
    # (otherwise splitting the grouped result would need lane-rotate stores).
    G_cap = group_size if (group_size > 1 and M % 128 == 0) else 1
    in_b = P * C_in * L * isz_c                    # per batch element
    out_b = C_out * M * isz_o                      # per batch element
    w_b = C_out * (K * C_in) * isz_c
    ss_b = 2 * C_out * 128 * 4                     # scale+shift, lane-padded
    col_b = 2 * (K * C_in) * (G_cap * M) * isz_c   # ping-pong im2col scratch
    fixed = 2 * (w_b + ss_b) + col_b               # double-buffered constants
    per_batch = 2 * (in_b + out_b)                 # double-buffered in/out
    n_blk = _pick_n_blk(N, per_batch, budget - fixed, G_cap)
    G = G_cap if (G_cap > 1 and n_blk % G_cap == 0) else 1
    n_groups = n_blk // G
    n_slots = 2 if n_groups >= 2 else 1
    grid = (N // n_blk,)

    kernel = _make_unit_tcn_kernel(
        n_blk=n_blk, G=G, n_slots=n_slots, C_in=C_in, C_out=C_out, K=K,
        stride=stride, pad=pad, T=T, T_out=T_out, V=V,
        in_is_padded=in_is_padded)

    # NOTE: w2/scale2/shift2 have constant index_maps, so Pallas DMAs them only
    # once; their buffer footprint is charged to `fixed` in the budget above.
    out_flat = pl.pallas_call(
        kernel,
        out_shape=jax.ShapeDtypeStruct((N, C_out, M), out_dtype),
        grid_spec=pltpu.PrefetchScalarGridSpec(
            num_scalar_prefetch=0,
            grid=grid,
            in_specs=[
                pl.BlockSpec((n_blk, P, C_in, L), lambda n: (n, 0, 0, 0)),
                pl.BlockSpec((C_out, K * C_in), lambda n: (0, 0)),
                pl.BlockSpec((C_out, 1), lambda n: (0, 0)),
                pl.BlockSpec((C_out, 1), lambda n: (0, 0)),
            ],
            out_specs=pl.BlockSpec((n_blk, C_out, M), lambda n: (n, 0, 0)),
            scratch_shapes=[pltpu.VMEM((n_slots, K * C_in, G * M),
                                       compute_dtype)],
        ),
        compiler_params=pltpu.CompilerParams(
            dimension_semantics=("parallel",),
            vmem_limit_bytes=int(vmem_limit),
        ),
    )(x4, w2, scale2, shift2)

    return out_flat.reshape(N, C_out, T_out, V)


# ----------------------------------------------------------------------------
# Parameter init (matches conv_init / bn_init) and pure-JAX reference.
# ----------------------------------------------------------------------------
def init_params(key, in_channels, out_channels, kernel_size):
    # Conv2d weight (C_out, C_in, K, 1); kaiming_normal_(mode='fan_out'):
    # fan_out = C_out * K * 1 ; std = sqrt(2 / fan_out). Conv bias -> 0.
    fan_out = out_channels * kernel_size * 1
    std = (2.0 / fan_out) ** 0.5
    w4 = jax.random.normal(
        key, (out_channels, in_channels, kernel_size, 1), dtype=jnp.float32) * std
    w = w4[..., 0]  # (C_out, C_in, K)

    # BatchNorm2d (inference): gamma=1, beta=0, mean=0, var=1, eps=1e-5.
    eps = 1e-5
    gamma = jnp.ones((out_channels,), jnp.float32)
    beta = jnp.zeros((out_channels,), jnp.float32)
    running_mean = jnp.zeros((out_channels,), jnp.float32)
    running_var = jnp.ones((out_channels,), jnp.float32)
    bn_scale = gamma / jnp.sqrt(running_var + eps)
    bn_shift = beta - running_mean * bn_scale
    return w, bn_scale, bn_shift


def reference_forward(x, w, bn_scale, bn_shift, *, kernel_size, stride):
    """Pure-JAX reference (lax conv, f32) for verification."""
    pad = (kernel_size - 1) // 2
    w4 = w[..., None]  # (C_out, C_in, K, 1)
    y = lax.conv_general_dilated(
        x, w4,
        window_strides=(stride, 1),
        padding=((pad, pad), (0, 0)),
        dimension_numbers=("NCHW", "OIHW", "NCHW"))
    return y * bn_scale[None, :, None, None] + bn_shift[None, :, None, None]


# ----------------------------------------------------------------------------
# Self-test.
# ----------------------------------------------------------------------------
if __name__ == "__main__":
    key = jax.random.PRNGKey(0)
    kx, kw = jax.random.split(key)

    C_in, C_out, T, V = 4, 8, 16, 16

    def run_check(N, K, stride, compute_dtype, atol, rtol, tag, **kwargs):
        x = jax.random.normal(kx, (N, C_in, T, V), dtype=jnp.float32)
        w, bn_scale, bn_shift = init_params(kw, C_in, C_out, K)
        ref = reference_forward(x, w, bn_scale, bn_shift,
                                kernel_size=K, stride=stride)
        out = jax.block_until_ready(unit_tcn_forward(
            x, w, bn_scale, bn_shift, kernel_size=K, stride=stride,
            compute_dtype=compute_dtype, **kwargs))
        assert out.shape == ref.shape, (tag, out.shape, ref.shape)
        assert jnp.allclose(out.astype(jnp.float32), ref,
                            atol=atol, rtol=rtol), ("mismatch", tag)
        return out

    # (K, stride) configs: main unit_tcn, strided unit_tcn, 1x1 strided residual.
    for (K, stride) in [(9, 1), (9, 2), (1, 2)]:
        # Exact-layout check with the f32 matmul path (tight tolerance).
        run_check(2, K, stride, jnp.float32, 1e-3, 1e-3, f"f32 K{K} s{stride}")
        # Default bf16-input / f32-accumulate fast path (loose tolerance).
        run_check(2, K, stride, jnp.bfloat16, 1e-1, 1e-1, f"bf16 K{K} s{stride}")

    # Larger batches exercise the grouped dot (G=2), the ping-pong im2col
    # double-buffer, and (N=16) the fori_loop group-pair path.
    run_check(8, 9, 1, jnp.float32, 1e-3, 1e-3, "f32 N8")
    run_check(8, 9, 2, jnp.float32, 1e-3, 1e-3, "f32 N8 s2")
    run_check(16, 9, 1, jnp.float32, 1e-3, 1e-3, "f32 N16")

    # Non-trivial BN scale/shift exercises the f32 epilogue scale+shift.
    x = jax.random.normal(kx, (2, C_in, T, V), dtype=jnp.float32)
    w, _, _ = init_params(kw, C_in, C_out, 9)
    ks, kb = jax.random.split(jax.random.PRNGKey(1))
    sc = 1.0 + 0.1 * jax.random.normal(ks, (C_out,), jnp.float32)
    sh = 0.1 * jax.random.normal(kb, (C_out,), jnp.float32)
    ref2 = reference_forward(x, w, sc, sh, kernel_size=9, stride=1)
    out2 = jax.block_until_ready(unit_tcn_forward(
        x, w, sc, sh, kernel_size=9, stride=1, compute_dtype=jnp.float32))
    assert jnp.allclose(out2, ref2, atol=1e-3, rtol=1e-3), "BN epilogue mismatch"

    # bf16-output path (halved store / HBM writeback traffic).
    outb = run_check(8, 9, 1, jnp.bfloat16, 1e-1, 1e-1, "bf16-out N8",
                     out_dtype=jnp.bfloat16)
    assert outb.dtype == jnp.bfloat16

    print("KERNEL_OK")
</pallas_src>

<mosaic_0001>
module attributes {stable_mosaic.version = 11 : i64} {
  func.func @kernel(%arg0: i32, %arg1: memref<1x1x4x256xf32, #tpu.memory_space<vmem>>, %arg2: memref<8x36xf32, #tpu.memory_space<vmem>>, %arg3: memref<8x1xf32, #tpu.memory_space<vmem>>, %arg4: memref<8x1xf32, #tpu.memory_space<vmem>>, %arg5: memref<1x8x256xf32, #tpu.memory_space<vmem>>, %arg6: memref<1x36x256xf32, #tpu.memory_space<vmem>>) attributes {dimension_semantics = [#tpu.dimension_semantics<parallel>], iteration_bounds = array<i64: 2>, scalar_prefetch = 0 : i64, scratch_operands = 1 : i64, tpu.core_type = #tpu.core_type<tc>, window_params = [{transform_indices = @transform_0, window_bounds = array<i64: 1, 1, 4, 256>}, {pipeline_mode = #tpu.pipeline_mode<synchronous>, transform_indices = @transform_1, window_bounds = array<i64: 8, 36>}, {pipeline_mode = #tpu.pipeline_mode<synchronous>, transform_indices = @transform_2, window_bounds = array<i64: 8, 1>}, {pipeline_mode = #tpu.pipeline_mode<synchronous>, transform_indices = @transform_3, window_bounds = array<i64: 8, 1>}, {transform_indices = @transform_4, window_bounds = array<i64: 1, 8, 256>}]} {
    %cst = arith.constant 0.000000e+00 : f32
    %0 = vector.broadcast %cst : f32 to vector<4x64xf32>
    %c0 = arith.constant 0 : index
    %c0_0 = arith.constant 0 : index
    %c0_1 = arith.constant 0 : index
    %1 = vector.load %arg6[%c0, %c0_0, %c0_1] : memref<1x36x256xf32, #tpu.memory_space<vmem>>, vector<1x4x64xf32>
    %2 = vector.shape_cast %1 : vector<1x4x64xf32> to vector<4x64xf32>
    %3 = vector.shape_cast %0 : vector<4x64xf32> to vector<1x4x64xf32>
    tpu.vector_store %arg6[%c0, %c0_0, %c0_1], %3 {strides = array<i32>} : memref<1x36x256xf32, #tpu.memory_space<vmem>>, vector<1x4x64xf32>,
    %cst_2 = arith.constant 0.000000e+00 : f32
    %4 = vector.broadcast %cst_2 : f32 to vector<4x48xf32>
    %c0_3 = arith.constant 0 : index
    %c4 = arith.constant 4 : index
    %c0_4 = arith.constant 0 : index
    %5 = vector.load %arg6[%c0_3, %c4, %c0_4] : memref<1x36x256xf32, #tpu.memory_space<vmem>>, vector<1x4x48xf32>
    %6 = vector.shape_cast %5 : vector<1x4x48xf32> to vector<4x48xf32>
    %7 = vector.shape_cast %4 : vector<4x48xf32> to vector<1x4x48xf32>
    tpu.vector_store %arg6[%c0_3, %c4, %c0_4], %7 {strides = array<i32>} : memref<1x36x256xf32, #tpu.memory_space<vmem>>, vector<1x4x48xf32>,
    %cst_5 = arith.constant 0.000000e+00 : f32
    %8 = vector.broadcast %cst_5 : f32 to vector<4x32xf32>
    %c0_6 = arith.constant 0 : index
    %c8 = arith.constant 8 : index
    %c0_7 = arith.constant 0 : index
    %9 = vector.load %arg6[%c0_6, %c8, %c0_7] : memref<1x36x256xf32, #tpu.memory_space<vmem>>, vector<1x4x32xf32>
    %10 = vector.shape_cast %9 : vector<1x4x32xf32> to vector<4x32xf32>
    %11 = vector.shape_cast %8 : vector<4x32xf32> to vector<1x4x32xf32>
    tpu.vector_store %arg6[%c0_6, %c8, %c0_7], %11 {strides = array<i32>} : memref<1x36x256xf32, #tpu.memory_space<vmem>>, vector<1x4x32xf32>,
    %cst_8 = arith.constant 0.000000e+00 : f32
    %12 = vector.broadcast %cst_8 : f32 to vector<4x16xf32>
    %c0_9 = arith.constant 0 : index
    %c12 = arith.constant 12 : index
    %c0_10 = arith.constant 0 : index
    %13 = vector.load %arg6[%c0_9, %c12, %c0_10] : memref<1x36x256xf32, #tpu.memory_space<vmem>>, vector<1x4x16xf32>
    %14 = vector.shape_cast %13 : vector<1x4x16xf32> to vector<4x16xf32>
    %15 = vector.shape_cast %12 : vector<4x16xf32> to vector<1x4x16xf32>
    tpu.vector_store %arg6[%c0_9, %c12, %c0_10], %15 {strides = array<i32>} : memref<1x36x256xf32, #tpu.memory_space<vmem>>, vector<1x4x16xf32>,
    %cst_11 = arith.constant 0.000000e+00 : f32
    %16 = vector.broadcast %cst_11 : f32 to vector<4x16xf32>
    %c0_12 = arith.constant 0 : index
    %c20 = arith.constant 20 : index
    %c240 = arith.constant 240 : index
    %17 = vector.load %arg6[%c0_12, %c20, %c240] : memref<1x36x256xf32, #tpu.memory_space<vmem>>, vector<1x4x16xf32>
    %18 = vector.shape_cast %17 : vector<1x4x16xf32> to vector<4x16xf32>
    %19 = vector.shape_cast %16 : vector<4x16xf32> to vector<1x4x16xf32>
    tpu.vector_store %arg6[%c0_12, %c20, %c240], %19 {strides = array<i32>} : memref<1x36x256xf32, #tpu.memory_space<vmem>>, vector<1x4x16xf32>,
    %cst_13 = arith.constant 0.000000e+00 : f32
    %20 = vector.broadcast %cst_13 : f32 to vector<4x32xf32>
    %c0_14 = arith.constant 0 : index
    %c24 = arith.constant 24 : index
    %c224 = arith.constant 224 : index
    %21 = vector.load %arg6[%c0_14, %c24, %c224] : memref<1x36x256xf32, #tpu.memory_space<vmem>>, vector<1x4x32xf32>
    %22 = vector.shape_cast %21 : vector<1x4x32xf32> to vector<4x32xf32>
    %23 = vector.shape_cast %20 : vector<4x32xf32> to vector<1x4x32xf32>
    tpu.vector_store %arg6[%c0_14, %c24, %c224], %23 {strides = array<i32>} : memref<1x36x256xf32, #tpu.memory_space<vmem>>, vector<1x4x32xf32>,
    %cst_15 = arith.constant 0.000000e+00 : f32
    %24 = vector.broadcast %cst_15 : f32 to vector<4x48xf32>
    %c0_16 = arith.constant 0 : index
    %c28 = arith.constant 28 : index
    %c208 = arith.constant 208 : index
    %25 = vector.load %arg6[%c0_16, %c28, %c208] : memref<1x36x256xf32, #tpu.memory_space<vmem>>, vector<1x4x48xf32>
    %26 = vector.shape_cast %25 : vector<1x4x48xf32> to vector<4x48xf32>
    %27 = vector.shape_cast %24 : vector<4x48xf32> to vector<1x4x48xf32>
    tpu.vector_store %arg6[%c0_16, %c28, %c208], %27 {strides = array<i32>} : memref<1x36x256xf32, #tpu.memory_space<vmem>>, vector<1x4x48xf32>,
    %cst_17 = arith.constant 0.000000e+00 : f32
    %28 = vector.broadcast %cst_17 : f32 to vector<4x64xf32>
    %c0_18 = arith.constant 0 : index
    %c32 = arith.constant 32 : index
    %c192 = arith.constant 192 : index
    %29 = vector.load %arg6[%c0_18, %c32, %c192] : memref<1x36x256xf32, #tpu.memory_space<vmem>>, vector<1x4x64xf32>
    %30 = vector.shape_cast %29 : vector<1x4x64xf32> to vector<4x64xf32>
    %31 = vector.shape_cast %28 : vector<4x64xf32> to vector<1x4x64xf32>
    tpu.vector_store %arg6[%c0_18, %c32, %c192], %31 {strides = array<i32>} : memref<1x36x256xf32, #tpu.memory_space<vmem>>, vector<1x4x64xf32>,
    %c0_19 = arith.constant 0 : index
    %c0_20 = arith.constant 0 : index
    %c0_21 = arith.constant 0 : index
    %c0_22 = arith.constant 0 : index
    %32 = vector.load %arg1[%c0_19, %c0_20, %c0_21, %c0_22] : memref<1x1x4x256xf32, #tpu.memory_space<vmem>>, vector<1x1x4x192xf32>
    %33 = vector.shape_cast %32 : vector<1x1x4x192xf32> to vector<4x192xf32>
    %c0_23 = arith.constant 0 : index
    %c0_24 = arith.constant 0 : index
    %c64 = arith.constant 64 : index
    %34 = vector.load %arg6[%c0_23, %c0_24, %c64] : memref<1x36x256xf32, #tpu.memory_space<vmem>>, vector<1x4x192xf32>
    %35 = vector.shape_cast %34 : vector<1x4x192xf32> to vector<4x192xf32>
    %36 = vector.shape_cast %33 : vector<4x192xf32> to vector<1x4x192xf32>
    tpu.vector_store %arg6[%c0_23, %c0_24, %c64], %36 {strides = array<i32>} : memref<1x36x256xf32, #tpu.memory_space<vmem>>, vector<1x4x192xf32>,
    %c0_25 = arith.constant 0 : index
    %c0_26 = arith.constant 0 : index
    %c0_27 = arith.constant 0 : index
    %c0_28 = arith.constant 0 : index
    %37 = vector.load %arg1[%c0_25, %c0_26, %c0_27, %c0_28] : memref<1x1x4x256xf32, #tpu.memory_space<vmem>>, vector<1x1x4x208xf32>
    %38 = vector.shape_cast %37 : vector<1x1x4x208xf32> to vector<4x208xf32>
    %c0_29 = arith.constant 0 : index
    %c4_30 = arith.constant 4 : index
    %c48 = arith.constant 48 : index
    %39 = vector.load %arg6[%c0_29, %c4_30, %c48] : memref<1x36x256xf32, #tpu.memory_space<vmem>>, vector<1x4x208xf32>
    %40 = vector.shape_cast %39 : vector<1x4x208xf32> to vector<4x208xf32>
    %41 = vector.shape_cast %38 : vector<4x208xf32> to vector<1x4x208xf32>
    tpu.vector_store %arg6[%c0_29, %c4_30, %c48], %41 {strides = array<i32>} : memref<1x36x256xf32, #tpu.memory_space<vmem>>, vector<1x4x208xf32>,
    %c0_31 = arith.constant 0 : index
    %c0_32 = arith.constant 0 : index
    %c0_33 = arith.constant 0 : index
    %c0_34 = arith.constant 0 : index
    %42 = vector.load %arg1[%c0_31, %c0_32, %c0_33, %c0_34] : memref<1x1x4x256xf32, #tpu.memory_space<vmem>>, vector<1x1x4x224xf32>
    %43 = vector.shape_cast %42 : vector<1x1x4x224xf32> to vector<4x224xf32>
    %c0_35 = arith.constant 0 : index
    %c8_36 = arith.constant 8 : index
    %c32_37 = arith.constant 32 : index
    %44 = vector.load %arg6[%c0_35, %c8_36, %c32_37] : memref<1x36x256xf32, #tpu.memory_space<vmem>>, vector<1x4x224xf32>
    %45 = vector.shape_cast %44 : vector<1x4x224xf32> to vector<4x224xf32>
    %46 = vector.shape_cast %43 : vector<4x224xf32> to vector<1x4x224xf32>
    tpu.vector_store %arg6[%c0_35, %c8_36, %c32_37], %46 {strides = array<i32>} : memref<1x36x256xf32, #tpu.memory_space<vmem>>, vector<1x4x224xf32>,
    %c0_38 = arith.constant 0 : index
    %c0_39 = arith.constant 0 : index
    %c0_40 = arith.constant 0 : index
    %c0_41 = arith.constant 0 : index
    %47 = vector.load %arg1[%c0_38, %c0_39, %c0_40, %c0_41] : memref<1x1x4x256xf32, #tpu.memory_space<vmem>>, vector<1x1x4x240xf32>
    %48 = vector.shape_cast %47 : vector<1x1x4x240xf32> to vector<4x240xf32>
    %c0_42 = arith.constant 0 : index
    %c12_43 = arith.constant 12 : index
    %c16 = arith.constant 16 : index
    %49 = vector.load %arg6[%c0_42, %c12_43, %c16] : memref<1x36x256xf32, #tpu.memory_space<vmem>>, vector<1x4x240xf32>
    %50 = vector.shape_cast %49 : vector<1x4x240xf32> to vector<4x240xf32>
    %51 = vector.shape_cast %48 : vector<4x240xf32> to vector<1x4x240xf32>
    tpu.vector_store %arg6[%c0_42, %c12_43, %c16], %51 {strides = array<i32>} : memref<1x36x256xf32, #tpu.memory_space<vmem>>, vector<1x4x240xf32>,
    %c0_44 = arith.constant 0 : index
    %c0_45 = arith.constant 0 : index
    %c0_46 = arith.constant 0 : index
    %c0_47 = arith.constant 0 : index
    %52 = vector.load %arg1[%c0_44, %c0_45, %c0_46, %c0_47] : memref<1x1x4x256xf32, #tpu.memory_space<vmem>>, vector<1x1x4x256xf32>
    %53 = vector.shape_cast %52 : vector<1x1x4x256xf32> to vector<4x256xf32>
    %c0_48 = arith.constant 0 : index
    %c16_49 = arith.constant 16 : index
    %c0_50 = arith.constant 0 : index
    %54 = vector.load %arg6[%c0_48, %c16_49, %c0_50] : memref<1x36x256xf32, #tpu.memory_space<vmem>>, vector<1x4x256xf32>
    %55 = vector.shape_cast %54 : vector<1x4x256xf32> to vector<4x256xf32>
    %56 = vector.shape_cast %53 : vector<4x256xf32> to vector<1x4x256xf32>
    tpu.vector_store %arg6[%c0_48, %c16_49, %c0_50], %56 {strides = array<i32>} : memref<1x36x256xf32, #tpu.memory_space<vmem>>, vector<1x4x256xf32>,
    %c0_51 = arith.constant 0 : index
    %c0_52 = arith.constant 0 : index
    %c0_53 = arith.constant 0 : index
    %c16_54 = arith.constant 16 : index
    %57 = vector.load %arg1[%c0_51, %c0_52, %c0_53, %c16_54] : memref<1x1x4x256xf32, #tpu.memory_space<vmem>>, vector<1x1x4x240xf32>
    %58 = vector.shape_cast %57 : vector<1x1x4x240xf32> to vector<4x240xf32>
    %c0_55 = arith.constant 0 : index
    %c20_56 = arith.constant 20 : index
    %c0_57 = arith.constant 0 : index
    %59 = vector.load %arg6[%c0_55, %c20_56, %c0_57] : memref<1x36x256xf32, #tpu.memory_space<vmem>>, vector<1x4x240xf32>
    %60 = vector.shape_cast %59 : vector<1x4x240xf32> to vector<4x240xf32>
    %61 = vector.shape_cast %58 : vector<4x240xf32> to vector<1x4x240xf32>
    tpu.vector_store %arg6[%c0_55, %c20_56, %c0_57], %61 {strides = array<i32>} : memref<1x36x256xf32, #tpu.memory_space<vmem>>, vector<1x4x240xf32>,
    %c0_58 = arith.constant 0 : index
    %c0_59 = arith.constant 0 : index
    %c0_60 = arith.constant 0 : index
    %c32_61 = arith.constant 32 : index
    %62 = vector.load %arg1[%c0_58, %c0_59, %c0_60, %c32_61] : memref<1x1x4x256xf32, #tpu.memory_space<vmem>>, vector<1x1x4x224xf32>
    %63 = vector.shape_cast %62 : vector<1x1x4x224xf32> to vector<4x224xf32>
    %c0_62 = arith.constant 0 : index
    %c24_63 = arith.constant 24 : index
    %c0_64 = arith.constant 0 : index
    %64 = vector.load %arg6[%c0_62, %c24_63, %c0_64] : memref<1x36x256xf32, #tpu.memory_space<vmem>>, vector<1x4x224xf32>
    %65 = vector.shape_cast %64 : vector<1x4x224xf32> to vector<4x224xf32>
    %66 = vector.shape_cast %63 : vector<4x224xf32> to vector<1x4x224xf32>
    tpu.vector_store %arg6[%c0_62, %c24_63, %c0_64], %66 {strides = array<i32>} : memref<1x36x256xf32, #tpu.memory_space<vmem>>, vector<1x4x224xf32>,
    %c0_65 = arith.constant 0 : index
    %c0_66 = arith.constant 0 : index
    %c0_67 = arith.constant 0 : index
    %c48_68 = arith.constant 48 : index
    %67 = vector.load %arg1[%c0_65, %c0_66, %c0_67, %c48_68] : memref<1x1x4x256xf32, #tpu.memory_space<vmem>>, vector<1x1x4x208xf32>
    %68 = vector.shape_cast %67 : vector<1x1x4x208xf32> to vector<4x208xf32>
    %c0_69 = arith.constant 0 : index
    %c28_70 = arith.constant 28 : index
    %c0_71 = arith.constant 0 : index
    %69 = vector.load %arg6[%c0_69, %c28_70, %c0_71] : memref<1x36x256xf32, #tpu.memory_space<vmem>>, vector<1x4x208xf32>
    %70 = vector.shape_cast %69 : vector<1x4x208xf32> to vector<4x208xf32>
    %71 = vector.shape_cast %68 : vector<4x208xf32> to vector<1x4x208xf32>
    tpu.vector_store %arg6[%c0_69, %c28_70, %c0_71], %71 {strides = array<i32>} : memref<1x36x256xf32, #tpu.memory_space<vmem>>, vector<1x4x208xf32>,
    %c0_72 = arith.constant 0 : index
    %c0_73 = arith.constant 0 : index
    %c0_74 = arith.constant 0 : index
    %c64_75 = arith.constant 64 : index
    %72 = vector.load %arg1[%c0_72, %c0_73, %c0_74, %c64_75] : memref<1x1x4x256xf32, #tpu.memory_space<vmem>>, vector<1x1x4x192xf32>
    %73 = vector.shape_cast %72 : vector<1x1x4x192xf32> to vector<4x192xf32>
    %c0_76 = arith.constant 0 : index
    %c32_77 = arith.constant 32 : index
    %c0_78 = arith.constant 0 : index
    %74 = vector.load %arg6[%c0_76, %c32_77, %c0_78] : memref<1x36x256xf32, #tpu.memory_space<vmem>>, vector<1x4x192xf32>
    %75 = vector.shape_cast %74 : vector<1x4x192xf32> to vector<4x192xf32>
    %76 = vector.shape_cast %73 : vector<4x192xf32> to vector<1x4x192xf32>
    tpu.vector_store %arg6[%c0_76, %c32_77, %c0_78], %76 {strides = array<i32>} : memref<1x36x256xf32, #tpu.memory_space<vmem>>, vector<1x4x192xf32>,
    %c0_79 = arith.constant 0 : index
    %c0_80 = arith.constant 0 : index
    %77 = vector.load %arg2[%c0_79, %c0_80] : memref<8x36xf32, #tpu.memory_space<vmem>>, vector<8x36xf32>
    %c0_81 = arith.constant 0 : index
    %c0_82 = arith.constant 0 : index
    %c0_83 = arith.constant 0 : index
    %78 = vector.load %arg6[%c0_81, %c0_82, %c0_83] : memref<1x36x256xf32, #tpu.memory_space<vmem>>, vector<1x36x256xf32>
    %79 = vector.shape_cast %78 : vector<1x36x256xf32> to vector<36x256xf32>
    %cst_84 = arith.constant dense<0.000000e+00> : vector<8x256xf32>
    %80 = tpu.matmul %77, %79, %cst_84 {dimension_numbers = #tpu.dot_dimension_numbers<[1], [0], [0], [1], [0, 0, 1, 1], [], []>} : vector<8x36xf32>, vector<36x256xf32>, vector<8x256xf32> -> vector<8x256xf32>
    %c0_85 = arith.constant 0 : index
    %c0_86 = arith.constant 0 : index
    %81 = vector.load %arg3[%c0_85, %c0_86] : memref<8x1xf32, #tpu.memory_space<vmem>>, vector<8x1xf32>
    %82 = vector.broadcast %81 : vector<8x1xf32> to vector<8x256xf32>
    %83 = arith.mulf %80, %82 : vector<8x256xf32>
    %c0_87 = arith.constant 0 : index
    %c0_88 = arith.constant 0 : index
    %84 = vector.load %arg4[%c0_87, %c0_88] : memref<8x1xf32, #tpu.memory_space<vmem>>, vector<8x1xf32>
    %85 = vector.broadcast %84 : vector<8x1xf32> to vector<8x256xf32>
    %86 = arith.addf %83, %85 : vector<8x256xf32>
    %c0_89 = arith.constant 0 : index
    %c0_90 = arith.constant 0 : index
    %c0_91 = arith.constant 0 : index
    %87 = vector.load %arg5[%c0_89, %c0_90, %c0_91] : memref<1x8x256xf32, #tpu.memory_space<vmem>>, vector<1x8x256xf32>
    %88 = vector.shape_cast %87 : vector<1x8x256xf32> to vector<8x256xf32>
    %89 = vector.shape_cast %86 : vector<8x256xf32> to vector<1x8x256xf32>
    tpu.vector_store %arg5[%c0_89, %c0_90, %c0_91], %89 {strides = array<i32>} : memref<1x8x256xf32, #tpu.memory_space<vmem>>, vector<1x8x256xf32>,
    return
  }
  func.func @transform_0(%arg0: i32) -> (i32, i32, i32, i32) {
    %c0_i32 = arith.constant 0 : i32
    %c0_i32_0 = arith.constant 0 : i32
    %c0_i32_1 = arith.constant 0 : i32
    %c0_i32_2 = arith.constant 0 : i32
    return %arg0, %c0_i32, %c0_i32_0, %c0_i32_1 : i32, i32, i32, i32
  }
  func.func @transform_1(%arg0: i32) -> (i32, i32) {
    %c0_i32 = arith.constant 0 : i32
    %c0_i32_0 = arith.constant 0 : i32
    %c0_i32_1 = arith.constant 0 : i32
    return %c0_i32, %c0_i32_0 : i32, i32
  }
  func.func @transform_2(%arg0: i32) -> (i32, i32) {
    %c0_i32 = arith.constant 0 : i32
    %c0_i32_0 = arith.constant 0 : i32
    %c0_i32_1 = arith.constant 0 : i32
    return %c0_i32, %c0_i32_0 : i32, i32
  }
  func.func @transform_3(%arg0: i32) -> (i32, i32) {
    %c0_i32 = arith.constant 0 : i32
    %c0_i32_0 = arith.constant 0 : i32
    %c0_i32_1 = arith.constant 0 : i32
    return %c0_i32, %c0_i32_0 : i32, i32
  }
  func.func @transform_4(%arg0: i32) -> (i32, i32, i32) {
    %c0_i32 = arith.constant 0 : i32
    %c0_i32_0 = arith.constant 0 : i32
    %c0_i32_1 = arith.constant 0 : i32
    return %arg0, %c0_i32, %c0_i32_0 : i32, i32, i32
  }
}

</mosaic_0001>

<bundles_post_ra>
// kernel: tpu_custom_call.1
= control target key start
LH: loop header
LB: loop body
LE: loop exit
PB: predicated region body
PF: predicated region fallthrough
CT: control target
= control target key end

     0   :  { %9 = vsyncpa [#allocation4], 0  ;;  %s1218_s0 = inlined_call_operand.hbm [shape: f32[2,1,4,256], index: 0, kind: input, shape index: {}]   ;;  %s1219_s1 = inlined_call_operand.hbm [shape: f32[8,36], index: 1, kind: input, shape index: {}]   ;;  %s1220_s2 = inlined_call_operand.hbm [shape: f32[8,1], index: 2, kind: input, shape index: {}]   ;;  %s1221_s3 = inlined_call_operand.hbm [shape: f32[8,1], index: 3, kind: input, shape index: {}]   ;;  %s1222_s4 = inlined_call_operand.hbm [shape: f32[2,8,256], index: 4, kind: output, shape index: {}]  }
   0x1   :  { %11 = vsyncpa [#allocation4 + $0x1], 0 }
   0x2   :  { %12 = vsyncpa [#allocation7], 0 }
   0x3   :  { %13 = vsyncpa [#allocation10], 0 }
   0x4   :  { %14 = vsyncpa [#allocation5], 0 }
   0x5   :  { %16 = vsyncpa [#allocation5 + $0x1], 0  ;;  %s960_s15 = smov 0   ;;  %s962_s16 = smov 0  }
   0x6   :  { %s964_s17 = smov 0   ;;  %s966_s18 = smov 0  }
   0x7 LB: > { %s981_s19 = sadd.s32 4294967295, %s919_s18   ;;  %s608_s20 = sadd.s32 4294967294, %s919_s18   ;;  %s919_s18 = sphi %s966_s18, %s1245_s18   ;;  %s915_s17 = sphi %s964_s17, %s1244_s17   ;;  %s911_s16 = sphi %s962_s16, %s1243_s16   ;;  %s907_s15 = sphi %s960_s15, %s1242_s15  }
   0x8   : > { %p42_p0 = scmp.ne.s32.totalorder %s911_s16, %s907_s15  ;;  %p1223_p1 = scmp.eq.s32.totalorder %s981_s19, 0 }
   0x9   : > { %p135_p3 = scmp.eq.s32.totalorder %s608_s20, 1  ;;  %p609_p5 = scmp.ge.s32.totalorder %s919_s18, 1 }
   0xa   : > { %p990_p4 = por %p1223_p1, %p42_p0  ;;  %p142_p7 = scmp.lt.s32.totalorder %s919_s18, 3 }
   0xb   : > { %p995_p6 = por %p135_p3, %p42_p0  ;;  %s921_s24 = smov [#allocation6]  }
   0xc   : > { %s1226_s21 = scalar_select %p990_p4, 1, 0 }
   0xd   : > { %s1227_s22 = scalar_select %p995_p6, 1, 0 }
   0xe   : > { %p1000_p8 = pnand %p609_p5, %p142_p7  ;;  %s155_s25 = sshll.u32 %s921_s24, 4  ;;  %s156_s25 = int_to_ptr.vmem [resolvable:$true] %s155_s25 }
   0xf   : > { %s922_s26 = smov [#allocation8]   ;;  %s923_s29 = smov [#allocation9]  }
  0x10   : > { %s1228_s23 = scalar_select %p1000_p8, 1, 0 }
  0x11   : > { %p657_p10 = pneg %p1000_p8  ;;  %s166_s27 = sshll.u32 %s922_s26, 4  ;;  %s1013_s27 = int_to_ptr.vmem [resolvable:$true] %s166_s27 }
  0x12   : > { %s177_s30 = sshll.u32 %s923_s29, 4  ;;  %s731_s7 = scalar_lea.hbm %s1219_s1, 128  ;;  %s1015_s30 = int_to_ptr.vmem [resolvable:$true] %s177_s30 }
  0x13   : > { %p1009_p11 = pnand %p657_p10, %p1223_p1  ;;  %p732_p12 = scmp.ne.s32.totalorder %s1219_s1, %s731_s7 }
  0x14   : > { %p738_p5 = scmp.lt.u32.totalorder %s731_s7, %s1219_s1 }
  0x15   : > { %p1025_p13 = pneg %p1009_p11 }
  0x17   : > { %p734_p0 = pnand %p1025_p13, %p732_p12 }
  0x19   : > { %p735_p3 = pneg %p734_p0 }
  0x1b   : > { %p740_p7 = pnand %p738_p5, %p735_p3 }
  0x1d   : > { %743 = shalt.err (!%p740_p7)
}
  0x1e   : > { %s744_s13 = scalar_lea.vmem %s156_s25, 128  ;;  %p752_p2 = scmp.lt.s32.totalorder %s156_s25, %s156_s25 }
  0x1f   : > { %p745_p10 = scmp.ne.s32.totalorder %s156_s25, %s744_s13  ;;  %p753_p6 = scmp.lt.s32.totalorder %s744_s13, %s744_s13 }
  0x21   : > { %p747_p9 = pnand %p745_p10, %p1025_p13  ;;  %p754_p4 = por %p753_p6, %p752_p2 }
  0x23   : > { %p748_p1 = pneg %p747_p9 }
  0x25   : > { %p755_p8 = pnand %p754_p4, %p748_p1 }
  0x27   : > { %758 = shalt.err (!%p755_p8)
}
  0x28   : > { %660 = dma.hbm_to_vmem [thread:$0]  (!%p1009_p11), %s1219_s1, 128, %s156_s25, [#allocation7]  }
  0x29   : > { %s759_s29 = scalar_lea.hbm %s1220_s2, 128 }
  0x2a   : > { %p760_p9 = scmp.ne.s32.totalorder %s1220_s2, %s759_s29  ;;  %p766_p1 = scmp.lt.u32.totalorder %s759_s29, %s1220_s2 }
  0x2c   : > { %p762_p12 = pnand %p760_p9, %p1025_p13 }
  0x2e   : > { %p763_p2 = pneg %p762_p12 }
  0x30   : > { %p768_p4 = pnand %p766_p1, %p763_p2 }
  0x32   : > { %771 = shalt.err (!%p768_p4)
}
  0x33   : > { %s772_s25 = scalar_lea.vmem %s1013_s27, 128  ;;  %p780_p3 = scmp.lt.s32.totalorder %s1013_s27, %s1013_s27 }
  0x34   : > { %p773_p6 = scmp.ne.s32.totalorder %s1013_s27, %s772_s25  ;;  %p781_p5 = scmp.lt.s32.totalorder %s772_s25, %s772_s25 }
  0x36   : > { %p775_p8 = pnand %p773_p6, %p1025_p13  ;;  %p782_p7 = por %p781_p5, %p780_p3 }
  0x38   : > { %p776_p0 = pneg %p775_p8 }
  0x3a   : > { %p783_p10 = pnand %p782_p7, %p776_p0 }
  0x3c   : > { %786 = shalt.err (!%p783_p10)
}
  0x3d   : > { %663 = dma.hbm_to_vmem [thread:$0]  (!%p1009_p11), %s1220_s2, 128, %s1013_s27, [#allocation7]  }
  0x3e   : > { %s787_s14 = scalar_lea.hbm %s1221_s3, 128 }
  0x3f   : > { %p788_p9 = scmp.ne.s32.totalorder %s1221_s3, %s787_s14  ;;  %p794_p1 = scmp.lt.u32.totalorder %s787_s14, %s1221_s3 }
  0x41   : > { %p790_p12 = pnand %p788_p9, %p1025_p13 }
  0x43   : > { %p791_p2 = pneg %p790_p12 }
  0x45   : > { %p796_p4 = pnand %p794_p1, %p791_p2 }
  0x47   : > { %799 = shalt.err (!%p796_p4)
}
  0x48   : > { %s800_s27 = scalar_lea.vmem %s1015_s30, 128  ;;  %p808_p3 = scmp.lt.s32.totalorder %s1015_s30, %s1015_s30 }
  0x49   : > { %p801_p6 = scmp.ne.s32.totalorder %s1015_s30, %s800_s27  ;;  %p809_p5 = scmp.lt.s32.totalorder %s800_s27, %s800_s27 }
  0x4b   : > { %p803_p8 = pnand %p801_p6, %p1025_p13  ;;  %p810_p7 = por %p809_p5, %p808_p3 }
  0x4d   : > { %p804_p0 = pneg %p803_p8 }
  0x4f   : > { %p811_p10 = pnand %p810_p7, %p804_p0 }
  0x51   : > { %814 = shalt.err (!%p811_p10)
}
  0x52   : > { %666 = dma.hbm_to_vmem [thread:$0]  (!%p1009_p11), %s1221_s3, 128, %s1015_s30, [#allocation10]  }
  0x53   : > { %s1088_s10 = sadd.s32 1, %s919_s18   ;;  %s29_s7 = sadd.s32 1, %s915_s17 }
  0x54   : > { %s26_s28 = ssub.s32 %s919_s18, %s1088_s10  ;;  %p36_p9 = scmp.ne.s32.totalorder %s915_s17, %s911_s16 }
  0x55   : > { %p27_p13 = scmp.eq.s32.totalorder %s26_s28, 0  ;;  %p37_p12 = scmp.eq.s32.totalorder %s919_s18, 0 }
  0x56   : > { %p678_p2 = scmp.lt.s32.totalorder %s919_s18, 2  ;;  %p1231_p4 = scmp.eq.s32.totalorder %s981_s19, 1 }
  0x57   : > { %s1098_s8 = scalar_select %p27_p13, %s915_s17, %s29_s7  }
  0x58   : > { %p38_p1 = por %p37_p12, %p36_p9  ;;  %p1102_p6 = por %p1231_p4, %p36_p9 }
  0x59   : > { %s188_s9 = sand.u32 1, %s915_s17   ;;  %s631_s11 = sshll.u32 %s919_s18, 7 }
  0x5a   : > { %s614_s30 = sshll.u32 %s188_s9, 3  ;;  %s1111_s14 = scalar_lea.hbm %s1218_s0, %s631_s11 }
  0x5b   : > { %s192_s20 = scalar_lea.vmem [#allocation3], %s614_s30  ;;  %p1113_p11 = pnand %p678_p2, %p38_p1 }
  0x5c   : > { %s200_s24 = sshll.u32 %s192_s20, 4  ;;  %s189_s29 = scalar_lea.sflag [#allocation4], %s188_s9  ;;  %s1117_s24 = int_to_ptr.vmem [resolvable:$true] %s200_s24 }
  0x5d   : > { %s815_s27 = scalar_lea.hbm %s1111_s14, 128  ;;  %p817_p0 = pneg %p1113_p11 }
  0x5e   : > { %p816_p8 = scmp.ne.s32.totalorder %s1111_s14, %s815_s27  ;;  %s820_s28 = scalar_lea.hbm %s1218_s0, 256 }
  0x5f   : > { %p821_p7 = scmp.lt.u32.totalorder %s1111_s14, %s1218_s0  ;;  %p822_p10 = scmp.lt.u32.totalorder %s820_s28, %s815_s27 }
  0x60   : > { %p818_p3 = pnand %p817_p0, %p816_p8  ;;  %p824_p9 = scmp.lt.u32.totalorder %s815_s27, %s1111_s14 }
  0x61   : > { %p823_p13 = por %p822_p10, %p821_p7 }
  0x62   : > { %p819_p5 = pneg %p818_p3 }
  0x63   : > { %p825_p12 = por %p824_p9, %p823_p13 }
  0x65   : > { %p826_p2 = pnand %p825_p12, %p819_p5 }
  0x67   : > { %829 = shalt.err (!%p826_p2)
}
  0x68   : > { %s830_s9 = scalar_lea.vmem %s1117_s24, 128  ;;  %s924_s30 = smov [#allocation3]  }
  0x69   : > { %p831_p1 = scmp.ne.s32.totalorder %s1117_s24, %s830_s9  ;;  %s835_s12 = sshll.u32 %s924_s30, 4  ;;  %s836_s12 = int_to_ptr.vmem [resolvable:$false] %s835_s12 }
  0x6a   : > { %s837_s13 = scalar_lea.vmem %s836_s12, 256  ;;  %p838_p3 = scmp.lt.s32.totalorder %s1117_s24, %s836_s12 }
  0x6b   : > { %p833_p4 = pnand %p831_p1, %p817_p0  ;;  %p839_p7 = scmp.lt.s32.totalorder %s837_s13, %s830_s9 }
  0x6d   : > { %p834_p8 = pneg %p833_p4  ;;  %p840_p10 = por %p839_p7, %p838_p3 }
  0x6f   : > { %p841_p13 = pnand %p840_p10, %p834_p8 }
  0x71   : > { %844 = shalt.err (!%p841_p13)
}
  0x72   : > { %670 = dma.hbm_to_vmem [thread:$0]  (!%p1113_p11), %s1111_s14, 128, %s1117_s24, %s189_s29  }
  0x73   : > { %p1234_p5 = scmp.ne.s32.totalorder %s1228_s23, 0 }
  0x74   : > { %s1147_s20 = sand.u32 (!%p1234_p5), 1, %s911_s16   ;;  %p1235_p0 = scmp.ne.s32.totalorder (!%p1234_p5), %s1226_s21, 0 }
  0x75   : > { %209 = sbr.rel (%p1234_p5) target bundleno = 520 (0x208), region = 36  ;;  %s618_s27 = sshll.u32 (!%p1234_p5), %s1147_s20, 3 }
  0x76   : > { %s212_s5 = scalar_lea.sflag (!%p1234_p5), [#allocation4], %s1147_s20  ;;  %s215_s6 = scalar_lea.vmem (!%p1234_p5), [#allocation3], %s618_s27 }
  0x7c   : > { %890 = dma.done.wait (%p1235_p0), %s212_s5, 128  }
  0x7d   : > { %892 = vsyncadd (%p1235_p0), %s212_s5, 4294967168  ;;  %p1236_p9 = scmp.eq.s32.totalorder %s981_s19, 0 }
  0x7f   : > { %894 = dma.done.wait (%p1236_p9), [#allocation7], 256   ;;  %p1237_p11 = pmov %p1236_p9 }
  0x80   : > { %p1238_p12 = pmov %p1236_p9 }
  0x81   : > { %896 = vsyncadd (%p1237_p11), [#allocation7], 4294967040 }
  0x82   : > { %898 = dma.done.wait (%p1238_p12), [#allocation10], 128   ;;  %p1239_p2 = pmov %p1236_p9 }
  0x83   : > { %vm252_vm0 = vcmask 519168   ;;  %vm266_vm1 = vcmask 1043968   ;;  %v925_v0 = vmov 0.0   ;;  %vm254_vm2 = vcmask 392196   ;;  %v281_v1 = vld [vmem:[%s215_s6] sm:$0xff]  ;;  %s926_s21 = smov 48  }
  0x84   : > { %900 = vsyncadd (%p1239_p2), [#allocation10], 4294967168  ;;  %253 = vst.msk [vmem:[#allocation2] sm:$0xf] %vm252_vm0, %v925_v0  ;;  %469 = vmatprep.mubr.f32.mxu0 %v925_v0  ;;  %vm256_vm3 = vcmask 257024   ;;  %vm258_vm4 = vcmask 130052   ;;  %286 = vrot.lane.b32.xlu1 %v281_v1, %s926_s21  ;;  %v283_v2 = vcombine.low %v281_v1, %v281_v1  ;;  %v270_v3 = vcombine.high %v281_v1, %v281_v1 }
  0x85   : > { %267 = vst.msk [vmem:[#allocation2 + $0x48] sm:$0xf] %vm266_vm1, %v925_v0  ;;  %s927_s23 = smov 64   ;;  %vm260_vm5 = vcmask 1048452   ;;  %327 = vst [vmem:[#allocation2 + $0x20] sm:$0xf] %v281_v1 }
  0x86   : > { %255 = vst.msk [vmem:[#allocation2] sm:$0xf0] %vm254_vm2, %v925_v0  ;;  %271 = vrot.lane.b32.xlu0 %v281_v1, %s927_s23  ;;  %328 = vst [vmem:[#allocation2 + $0x28] sm:$0xf] %v270_v3  ;;  %s928_s14 = smov 32   ;;  %vm262_vm6 = vcmask 1044224  }
  0x87   : > { %257 = vst.msk [vmem:[#allocation2 + $0x10] sm:$0xf] %vm256_vm3, %v925_v0  ;;  %vm264_vm7 = vcmask 1048196   ;;  %s929_s24 = smov 16   ;;  %s930_s26 = smov 112   ;;  %v933_v4 = vmov 0  }
  0x88   : > { %259 = vst.msk [vmem:[#allocation2 + $0x10] sm:$0xf0] %vm258_vm4, %v925_v0  ;;  %284 = vrot.lane.b32.xlu1 %v283_v2, %s926_s21  ;;  %s931_s29 = smov 96   ;;  %s932_s28 = smov 80   ;;  %727 = vset.pattern.permute.xlu0 %v933_v4  ;;  %v476_v5 = vld [vmem:[#allocation8] sm:$0xff]  ;;  %v484_v6 = vld [vmem:[#allocation9] sm:$0xff] }
  0x89   : > { %261 = vst.msk [vmem:[#allocation2 + $0x28] sm:$0xf0] %vm260_vm5, %v925_v0  ;;  %728 = vset.pattern.permute.xlu1 %v933_v4  ;;  %vm288_vm8 = vcmask 392192   ;;  %vm292_vm9 = vcmask 1047940   ;;  %vm306_vm10 = vcmask 1043712   ;;  %vm302_vm11 = vcmask 261120  }
  0x8a   : > { %298 = vrot.lane.b32.xlu0 %v281_v1, %s928_s14  ;;  %263 = vst.msk [vmem:[#allocation2 + $0x38] sm:$0xf] %vm262_vm6, %v925_v0  ;;  %vm275_vm12 = vcmask 523264   ;;  %vm316_vm13 = vcmask 130048   ;;  %vm320_vm14 = vcmask 1047684   ;;  %vm341_vm15 = vcmask 916484  }
  0x8b   : > { %265 = vst.msk [vmem:[#allocation2 + $0x38] sm:$0xf0] %vm264_vm7, %v925_v0  ;;  %vm355_vm2 = vcmask 781312   ;;  %vm350_vm3 = vcmask 785408   ;;  %vm369_vm4 = vcmask 654340   ;;  %vm364_vm5 = vcmask 654336  }
  0x8c   : > { %300 = vrot.lane.b32.xlu1 %v270_v3, %s928_s14  ;;  %vm398_vm6 = vcmask 1043456   ;;  %v383_v45 = vld [vmem:[#allocation6] sm:$0xff]  ;;  %vm394_vm7 = vcmask 293888   ;;  %s622_s7 = sshll.u32 %s1147_s20, 4  ;;  %s632_s11 = sshll.u32 %s981_s19, 8 }
  0x8d   : > { %s251_s9 = scalar_lea.vmem [#allocation11], %s622_s7  ;;  %s1174_s27 = scalar_lea.hbm %s1222_s4, %s632_s11 }
  0x8e   : > { %273 = vrot.lane.b32.xlu0 %v270_v3, %s927_s23  ;;  %s509_s30 = sshll.u32 %s251_s9, 4  ;;  %s495_s5 = scalar_lea.sflag [#allocation5], %s1147_s20  ;;  %s1176_s30 = int_to_ptr.vmem [resolvable:$true] %s509_s30 }
  0x8f   : > { %s845_s6 = scalar_lea.vmem %s1176_s30, 256  ;;  %s934_s19 = smov [#allocation11]  }
  0x90   : > { %314 = vrot.lane.b32.xlu1 %v281_v1, %s929_s24  ;;  %p846_p1 = scmp.ne.s32.totalorder %s1176_s30, %s845_s6  ;;  %s849_s21 = sshll.u32 %s934_s19, 4  ;;  %s850_s21 = int_to_ptr.vmem [resolvable:$false] %s849_s21 }
  0x91   : > { %p852_p3 = scmp.lt.s32.totalorder %s1176_s30, %s850_s21 }
  0x92   : > { %312 = vrot.lane.b32.xlu0 %v283_v2, %s929_s24  ;;  %p847_p4 = pnand %p846_p1, %p1102_p6 }
  0x94   : > { %334 = vrot.lane.b32.xlu1 %v281_v1, %s930_s26  ;;  %p848_p8 = pneg %p847_p4 }
  0x96   : > { %332 = vrot.lane.b32.xlu0 %v283_v2, %s930_s26 }
  0x98   : > { %348 = vrot.lane.b32.xlu1 %v270_v3, %s931_s29 }
  0x9a   : > { %346 = vrot.lane.b32.xlu0 %v281_v1, %s931_s29 }
  0x9c   : > { %362 = vrot.lane.b32.xlu1 %v281_v1, %s932_s28 }
  0x9e   : > { %360 = vrot.lane.b32.xlu0 %v283_v2, %s932_s28 }
  0xa0   : > { %376 = vrot.lane.b32.xlu1 %v270_v3, %s927_s23 }
  0xa2   : > { %374 = vrot.lane.b32.xlu0 %v281_v1, %s927_s23  ;;  %s851_s23 = scalar_lea.vmem %s850_s21, 512 }
  0xa3   : > { %p853_p7 = scmp.lt.s32.totalorder %s851_s23, %s845_s6 }
  0xa4   : > { %487 = vperm.xlu1 %728, %v484_v6  }
  0xa5   : > { %p854_p10 = por %p853_p7, %p852_p3 }
  0xa6   : > { %479 = vperm.xlu0 %727, %v476_v5  }
  0xa7   : > { %p855_p13 = pnand %p854_p10, %p848_p8 }
  0xf6   : > { %v287_v7 = vpop.permute.xlu1 %286 }
  0xf8   : > { %v272_v8 = vpop.permute.xlu0 %271 }
  0xf9   : > { %279 = vst.msk [vmem:[#allocation2] sm:$0xf] %vm266_vm1, %v272_v8  ;;  %vm336_vm1 = vcmask 916480  }
  0xfa   : > { %v285_v9 = vpop.permute.xlu1 %284 }
  0xfb   : > { %v289_v11 = vsel %vm288_vm8, %v285_v9, %v287_v7  ;;  %293 = vst.msk [vmem:[#allocation2] sm:$0xf0] %vm292_vm9, %v285_v9 }
  0xfc   : > { %v299_v10 = vpop.permute.xlu0 %298  ;;  %294 = vst [vmem:[#allocation2 + $0x8] sm:$0xf0] %v289_v11 }
  0xfd   : > { %307 = vst.msk [vmem:[#allocation2 + $0x10] sm:$0xf] %vm306_vm10, %v299_v10 }
  0xfe   : > { %v301_v12 = vpop.permute.xlu1 %300 }
  0xff   : > { %v303_v14 = vsel %vm302_vm11, %v299_v10, %v301_v12 }
 0x100   : > { %v274_v13 = vpop.permute.xlu0 %273  ;;  %308 = vst [vmem:[#allocation2 + $0x18] sm:$0xf] %v303_v14 }
 0x101   : > { %v276_v15 = vsel %vm275_vm12, %v272_v8, %v274_v13 }
 0x102   : > { %280 = vst [vmem:[#allocation2 + $0x8] sm:$0xf] %v276_v15  ;;  %v315_v16 = vpop.permute.xlu1 %314  ;;  %v384_v29 = vld [vmem:[#allocation2] sm:$0xff] }
 0x104   : > { %v313_v17 = vpop.permute.xlu0 %312 }
 0x105   : > { %v317_v18 = vsel %vm316_vm13, %v313_v17, %v315_v16  ;;  %321 = vst.msk [vmem:[#allocation2 + $0x10] sm:$0xf0] %vm320_vm14, %v313_v17 }
 0x106   : > { %322 = vst [vmem:[#allocation2 + $0x18] sm:$0xf0] %v317_v18  ;;  %v335_v19 = vpop.permute.xlu1 %334 }
 0x107   : > { %342 = vst.msk [vmem:[#allocation2 + $0x28] sm:$0xf0] %vm341_vm15, %v335_v19 }
 0x108   : > { %v333_v20 = vpop.permute.xlu0 %332 }
 0x109   : > { %v337_v21 = vsel %vm336_vm1, %v333_v20, %v335_v19  ;;  %v385_v26 = vld [vmem:[#allocation2 + $0x8] sm:$0xff] }
 0x10a   : > { %340 = vst [vmem:[#allocation2 + $0x20] sm:$0xf0] %v337_v21  ;;  %v349_v22 = vpop.permute.xlu1 %348 }
 0x10b   : > { %356 = vst.msk [vmem:[#allocation2 + $0x38] sm:$0xf] %vm355_vm2, %v349_v22 }
 0x10c   : > { %v347_v23 = vpop.permute.xlu0 %346  ;;  %v386_v24 = vld [vmem:[#allocation2 + $0x10] sm:$0xff] }
 0x10d   : > { %v351_v25 = vsel %vm350_vm3, %v347_v23, %v349_v22  ;;  %v387_v27 = vld [vmem:[#allocation2 + $0x18] sm:$0xff]  ;;  %v635_v30 = vpack.c.bf16 %v386_v24, %v384_v29 }
 0x10e   : > { %354 = vst [vmem:[#allocation2 + $0x30] sm:$0xf] %v351_v25  ;;  %v633_v28 = vpack.c.bf16 %v387_v27, %v385_v26  ;;  %v363_v31 = vpop.permute.xlu1 %362  ;;  %v389_v37 = vld [vmem:[#allocation2 + $0x28] sm:$0xff] }
 0x10f   : > { %370 = vst.msk [vmem:[#allocation2 + $0x38] sm:$0xf0] %vm369_vm4, %v363_v31 }
 0x110   : > { %634 = vmatprep.subr.bf16.mxu0 %v633_v28  ;;  %v361_v32 = vpop.permute.xlu0 %360 }
 0x111   : > { %v365_v33 = vsel %vm364_vm5, %v361_v32, %v363_v31  ;;  %636 = vmatpush1.bf16.msra.mxu0 %v635_v30  ;;  %v388_v40 = vld [vmem:[#allocation2 + $0x20] sm:$0xff] }
 0x112   : > { %368 = vst [vmem:[#allocation2 + $0x30] sm:$0xf0] %v365_v33  ;;  %v377_v34 = vpop.permute.xlu1 %376 }
 0x113   : > { %382 = vst.msk [vmem:[#allocation2 + $0x48] sm:$0xf] %vm252_vm0, %v377_v34 }
 0x114   : > { %v375_v35 = vpop.permute.xlu0 %374 }
 0x115   : > { %v378_v36 = vsel %vm275_vm12, %v375_v35, %v377_v34 }
 0x116   : > { %381 = vst [vmem:[#allocation2 + $0x40] sm:$0xf] %v378_v36  ;;  %v391_v38 = vld [vmem:[#allocation2 + $0x38] sm:$0xff] }
 0x117   : > { %v637_v39 = vpack.c.bf16 %v391_v38, %v389_v37 }
 0x119   : > { %v390_v41 = vld [vmem:[#allocation2 + $0x30] sm:$0xff]  ;;  %638 = vmatprep.subr.bf16.mxu0 %v637_v39 }
 0x11a   : > { %v639_v42 = vpack.c.bf16 %v390_v41, %v388_v40  ;;  %v393_v43 = vld [vmem:[#allocation2 + $0x48] sm:$0xf] }
 0x11c   : > { %640 = vmatpush1.bf16.msra.mxu0 %v639_v42 }
 0x11d   : > { %623 = vmatprep.subr.msk.mxu0 %vm398_vm6, %v393_v43  ;;  %v392_v44 = vld [vmem:[#allocation2 + $0x40] sm:$0xf] }
 0x120   : > { %624 = vmatpush1.msk.msra.mxu0 %vm398_vm6, %v392_v44 }
 0x121   : > { %625 = vmatmul.mubr.msk.f32.vlgmr.msra.gmra.mrb[0].mxu0 %vm394_vm7, %v383_v45 }
 0x123   : > { %v488_v48 = vpop.permute.xlu1 %487 }
 0x125   : > { %v480_v46 = vpop.permute.xlu0 %479 }
 0x1f4   : > { %v471_v47 = vpop.f32.mrb[0].mxu0 }
 0x1f5   : > { %v482_v49 = vmul.f32 %v480_v46, %v471_v47  ;;  %v473_v50 = vpop.f32.mrb[1].mxu0 }
 0x1f6   : > { %v483_v51 = vmul.f32 %v480_v46, %v473_v50 }
 0x1f7   : > { %v490_v52 = vadd.f32 %v488_v48, %v482_v49 }
 0x1f8   : > { %v491_v53 = vadd.f32 %v488_v48, %v483_v51 }
 0x1f9   : > { %492 = vst [vmem:[%s251_s9] sm:$0xff] %v490_v52 }
 0x1fa   : > { %493 = vst [vmem:[%s251_s9 + $0x8] sm:$0xff] %v491_v53 }
 0x1fb   : > { %858 = shalt.err (!%p855_p13)
}
 0x1fc   : > { %s859_s20 = scalar_lea.hbm %s1174_s27, 256  ;;  %s863_s26 = scalar_lea.hbm %s1222_s4, 512 }
 0x1fd   : > { %p860_p5 = scmp.ne.s32.totalorder %s1174_s27, %s859_s20  ;;  %p864_p11 = scmp.lt.u32.totalorder %s1174_s27, %s1222_s4 }
 0x1fe   : > { %p865_p12 = scmp.lt.u32.totalorder %s863_s26, %s859_s20  ;;  %p867_p1 = scmp.lt.u32.totalorder %s859_s20, %s1174_s27 }
 0x1ff   : > { %p861_p0 = pnand %p860_p5, %p1102_p6 }
 0x200   : > { %p866_p2 = por %p865_p12, %p864_p11 }
 0x201   : > { %p862_p9 = pneg %p861_p0 }
 0x202   : > { %p868_p4 = por %p867_p1, %p866_p2 }
 0x204   : > { %p869_p8 = pnand %p868_p4, %p862_p9 }
 0x206   : > { %872 = shalt.err (!%p869_p8)
}
 0x207   : > { %655 = dma.vmem_to_hbm [thread:$0]  (%p1102_p6), %s1176_s30, 256, %s1174_s27, %s495_s5  }
 0x208 PF: > { %s521_s7 = sand.u32 1, %s907_s15   ;;  %p1240_p3 = scmp.ne.s32.totalorder %s1227_s22, 0 }
 0x209   : > { %p1241_p7 = scmp.ge.s32.totalorder %s919_s18, 2  ;;  %s522_s11 = scalar_lea.sflag [#allocation5], %s521_s7 }
 0x20b   : > { %p672_p10 = pnand %p1241_p7, %p1240_p3 }
 0x20d   : > { %902 = dma.done.wait (!%p672_p10), %s522_s11, 256  }
 0x20e   : > { %904 = vsyncadd (!%p672_p10), %s522_s11, 4294967040  ;;  %p19_p13 = scmp.ge.s32.totalorder %s1088_s10, 4   ;;  %s1242_s15 = smov %s911_s16 }
 0x20f   : > { %s1243_s16 = smov %s915_s17  ;;  %s1244_s17 = smov %s1098_s8 }
 0x210   : > { %s1245_s18 = smov %s1088_s10  ;;  %21 = sbr.rel (!%p19_p13) target bundleno = 7 (0x7), region = 93 }
 0x217   :  { %527 = vsyncpa [#allocation4], 1 }
 0x218   :  { %529 = vsyncpa [#allocation4 + $0x1], 1 }
 0x219   :  { %530 = vsyncpa [#allocation7], 1 }
 0x21a   :  { %531 = vsyncpa [#allocation10], 1 }
 0x21b   :  { %532 = vsyncpa [#allocation5], 1 }
 0x21c   :  { %534 = vsyncpa [#allocation5 + $0x1], 1 }

</bundles_post_ra>
